<compile_context>
chip_gen: v7x
topology: tpu7x:2x2x1
jax: 0.10.0
libtpu: 0.0.40
codegen_flags: <defaults>
</compile_context>

<pallas_src>
import jax
import jax.numpy as jnp
from jax.experimental import pallas as pl
from jax.experimental.pallas import tpu as pltpu

NUM_LABELS_C = 5  # "five_classes"


def _combine_head_kernel(xd_ref, xr_ref, wd_ref, wr_ref, b_ref, out_ref):
    # xd_ref: [TB, Hd] bf16   xr_ref: [TB, Hr] bf16
    # wd_ref: [Hd, C_pad] bf16   wr_ref: [Hr, C_pad] bf16   b_ref: [1, C_pad] f32
    acc = jnp.dot(xd_ref[...], wd_ref[...],
                  preferred_element_type=jnp.float32)
    acc = acc + jnp.dot(xr_ref[...], wr_ref[...],
                        preferred_element_type=jnp.float32)
    out_ref[...] = (acc + b_ref[...]).astype(out_ref.dtype)


def _pick_batch_tile(B):
    """Batch tile for the head.

    Prefers multiples of 16 (bf16 sublane packing: one packed vreg is
    [16, 128]); uses 8 only as a last resort.  Large tiles amortize the
    ~0.35 us per-grid-step overhead (VMEM footprint at K~2k is only ~1.5 MB
    double-buffered).  When B >= 32, keep at least 2 grid steps so v7x's
    second TensorCore has work under dimension_semantics=("parallel",).
    """
    ladder = (1024, 512, 256, 128, 64, 32, 16, 8)
    tb = None
    for c in ladder:
        if B % c == 0:
            tb = c
            break
    if tb is None:
        return B  # odd / unaligned batch: single whole-batch tile (correct, slower)
    if B >= 32 and tb == B:
        for c in ladder:
            if c <= B // 2 and B % c == 0:
                return c
    return tb


def prepare_combine_head_params(combine_w, combine_b, d_hidden_size):
    """One-time (param-load) preparation of the combine_head parameters.

    combine_w: [Hd + Hr, C] float32  (nn.Linear weight, already transposed)
    combine_b: [C] float32
    Returns (w_d [Hd, C_pad] bf16, w_r [Hr, C_pad] bf16, b [1, C_pad] f32, C).
    """
    K, C = combine_w.shape
    C_pad = ((C + 127) // 128) * 128  # lane-dense output width
    w = jnp.zeros((K, C_pad), jnp.bfloat16).at[:, :C].set(
        combine_w.astype(jnp.bfloat16))
    w_d = w[:d_hidden_size]
    w_r = w[d_hidden_size:]
    b = jnp.zeros((1, C_pad), jnp.float32).at[:, :C].set(
        combine_b.astype(jnp.float32))
    return w_d, w_r, b, C


def sexist_model_forward(hidden_d, hidden_r, w_d, w_r, b_pad, num_labels):
    """Equivalent of SexistModel.forward, given precomputed backbone outputs.

    hidden_d : [B, S, Hd] float32  (d_model last_hidden_state)
    hidden_r : [B, S, Hr] float32  (r_model last_hidden_state)
    w_d/w_r/b_pad : pre-padded head params from prepare_combine_head_params
    returns  : (logits [B, num_labels], (hidden_d, hidden_r))
    """
    B, _, Hd = hidden_d.shape
    _, _, Hr = hidden_r.shape
    C_pad = b_pad.shape[-1]

    # CLS-only slices (all this head reads); bf16 for native MXU input.
    cls_d = hidden_d[:, 0, :].astype(jnp.bfloat16)   # [B, Hd]
    cls_r = hidden_r[:, 0, :].astype(jnp.bfloat16)   # [B, Hr]

    TB = _pick_batch_tile(B)
    grid = (B // TB,)

    logits_pad = pl.pallas_call(
        _combine_head_kernel,
        out_shape=jax.ShapeDtypeStruct((B, C_pad), jnp.float32),
        grid_spec=pl.GridSpec(
            grid=grid,
            in_specs=[
                pl.BlockSpec((TB, Hd), lambda i: (i, 0)),     # CLS (DeBERTa)
                pl.BlockSpec((TB, Hr), lambda i: (i, 0)),     # CLS (RoBERTa)
                pl.BlockSpec((Hd, C_pad), lambda i: (0, 0)),  # weight split d
                pl.BlockSpec((Hr, C_pad), lambda i: (0, 0)),  # weight split r
                pl.BlockSpec((1, C_pad), lambda i: (0, 0)),   # padded bias
            ],
            out_specs=pl.BlockSpec((TB, C_pad), lambda i: (i, 0)),
        ),
        compiler_params=pltpu.CompilerParams(
            dimension_semantics=("parallel",),
        ),
    )(cls_d, cls_r, w_d, w_r, b_pad)

    # x.view(-1, num_labels_C) in torch -> slice off lane padding + reshape.
    logits = logits_pad[:, :num_labels].reshape(-1, num_labels)
    return logits, (hidden_d, hidden_r)


if __name__ == "__main__":
    # Small shapes consistent with the forward: batch=2, seq=8, hidden=32 each.
    B, S, Hd, Hr, C = 2, 8, 32, 32, NUM_LABELS_C

    key = jax.random.PRNGKey(0)
    k_hd, k_hr, k_w, k_b = jax.random.split(key, 4)

    # Deterministic stand-ins for the backbone last_hidden_states.
    hidden_d = jax.random.normal(k_hd, (B, S, Hd), dtype=jnp.float32)
    hidden_r = jax.random.normal(k_hr, (B, S, Hr), dtype=jnp.float32)

    # combine_head = nn.Linear(Hd + Hr, C): deterministic init.
    combine_w = (jax.random.normal(k_w, (Hd + Hr, C), dtype=jnp.float32)
                 * (1.0 / jnp.sqrt(Hd + Hr)))
    combine_b = jax.random.normal(k_b, (C,), dtype=jnp.float32) * 0.01

    # One-time param preparation (hoisted out of the per-step forward).
    w_d, w_r, b_pad, num_labels = prepare_combine_head_params(
        combine_w, combine_b, Hd)

    logits, (hd_out, hr_out) = sexist_model_forward(
        hidden_d, hidden_r, w_d, w_r, b_pad, num_labels)
    jax.block_until_ready(logits)

    # Reference check in plain JAX (same bf16 inputs, f32 accumulation).
    # NOTE: the torch model runs the head in f32; bf16 inputs cause small
    # drift (well within 1e-3 here for a 5-class head).
    cls_d_ref = hidden_d[:, 0, :].astype(jnp.bfloat16)
    cls_r_ref = hidden_r[:, 0, :].astype(jnp.bfloat16)
    ref = (jnp.dot(cls_d_ref, combine_w[:Hd].astype(jnp.bfloat16),
                   preferred_element_type=jnp.float32)
           + jnp.dot(cls_r_ref, combine_w[Hd:].astype(jnp.bfloat16),
                     preferred_element_type=jnp.float32)
           + combine_b)
    assert logits.shape == (B, C)
    assert jnp.allclose(logits, ref, atol=1e-3, rtol=1e-3)

    print("KERNEL_OK")
</pallas_src>

<mosaic_0001>
module attributes {stable_mosaic.version = 11 : i64} {
  func.func @_combine_head_kernel(%arg0: i32, %arg1: memref<2x32xbf16, #tpu.memory_space<vmem>>, %arg2: memref<2x32xbf16, #tpu.memory_space<vmem>>, %arg3: memref<32x128xbf16, #tpu.memory_space<vmem>>, %arg4: memref<32x128xbf16, #tpu.memory_space<vmem>>, %arg5: memref<1x128xf32, #tpu.memory_space<vmem>>, %arg6: memref<2x128xf32, #tpu.memory_space<vmem>>) attributes {dimension_semantics = [#tpu.dimension_semantics<parallel>], iteration_bounds = array<i64: 1>, scalar_prefetch = 0 : i64, scratch_operands = 0 : i64, tpu.core_type = #tpu.core_type<tc>, window_params = [{transform_indices = @transform_0, window_bounds = array<i64: 2, 32>}, {transform_indices = @transform_1, window_bounds = array<i64: 2, 32>}, {pipeline_mode = #tpu.pipeline_mode<synchronous>, transform_indices = @transform_2, window_bounds = array<i64: 32, 128>}, {pipeline_mode = #tpu.pipeline_mode<synchronous>, transform_indices = @transform_3, window_bounds = array<i64: 32, 128>}, {pipeline_mode = #tpu.pipeline_mode<synchronous>, transform_indices = @transform_4, window_bounds = array<i64: 1, 128>}, {transform_indices = @transform_5, window_bounds = array<i64: 2, 128>}]} {
    %c0 = arith.constant 0 : index
    %c0_0 = arith.constant 0 : index
    %0 = vector.load %arg1[%c0, %c0_0] : memref<2x32xbf16, #tpu.memory_space<vmem>>, vector<2x32xbf16>
    %c0_1 = arith.constant 0 : index
    %c0_2 = arith.constant 0 : index
    %1 = vector.load %arg3[%c0_1, %c0_2] : memref<32x128xbf16, #tpu.memory_space<vmem>>, vector<32x128xbf16>
    %cst = arith.constant dense<0.000000e+00> : vector<2x128xf32>
    %2 = tpu.matmul %0, %1, %cst {dimension_numbers = #tpu.dot_dimension_numbers<[1], [0], [0], [1], [0, 0, 1, 1], [], []>} : vector<2x32xbf16>, vector<32x128xbf16>, vector<2x128xf32> -> vector<2x128xf32>
    %c0_3 = arith.constant 0 : index
    %c0_4 = arith.constant 0 : index
    %3 = vector.load %arg2[%c0_3, %c0_4] : memref<2x32xbf16, #tpu.memory_space<vmem>>, vector<2x32xbf16>
    %c0_5 = arith.constant 0 : index
    %c0_6 = arith.constant 0 : index
    %4 = vector.load %arg4[%c0_5, %c0_6] : memref<32x128xbf16, #tpu.memory_space<vmem>>, vector<32x128xbf16>
    %cst_7 = arith.constant dense<0.000000e+00> : vector<2x128xf32>
    %5 = tpu.matmul %3, %4, %cst_7 {dimension_numbers = #tpu.dot_dimension_numbers<[1], [0], [0], [1], [0, 0, 1, 1], [], []>} : vector<2x32xbf16>, vector<32x128xbf16>, vector<2x128xf32> -> vector<2x128xf32>
    %6 = arith.addf %2, %5 : vector<2x128xf32>
    %c0_8 = arith.constant 0 : index
    %c0_9 = arith.constant 0 : index
    %7 = vector.load %arg5[%c0_8, %c0_9] : memref<1x128xf32, #tpu.memory_space<vmem>>, vector<1x128xf32>
    %8 = vector.broadcast %7 : vector<1x128xf32> to vector<2x128xf32>
    %9 = arith.addf %6, %8 : vector<2x128xf32>
    %c0_10 = arith.constant 0 : index
    %c0_11 = arith.constant 0 : index
    %10 = vector.load %arg6[%c0_10, %c0_11] : memref<2x128xf32, #tpu.memory_space<vmem>>, vector<2x128xf32>
    tpu.vector_store %arg6[%c0_10, %c0_11], %9 {strides = array<i32>} : memref<2x128xf32, #tpu.memory_space<vmem>>, vector<2x128xf32>,
    return
  }
  func.func @transform_0(%arg0: i32) -> (i32, i32) {
    %c0_i32 = arith.constant 0 : i32
    %c0_i32_0 = arith.constant 0 : i32
    return %arg0, %c0_i32 : i32, i32
  }
  func.func @transform_1(%arg0: i32) -> (i32, i32) {
    %c0_i32 = arith.constant 0 : i32
    %c0_i32_0 = arith.constant 0 : i32
    return %arg0, %c0_i32 : i32, i32
  }
  func.func @transform_2(%arg0: i32) -> (i32, i32) {
    %c0_i32 = arith.constant 0 : i32
    %c0_i32_0 = arith.constant 0 : i32
    %c0_i32_1 = arith.constant 0 : i32
    return %c0_i32, %c0_i32_0 : i32, i32
  }
  func.func @transform_3(%arg0: i32) -> (i32, i32) {
    %c0_i32 = arith.constant 0 : i32
    %c0_i32_0 = arith.constant 0 : i32
    %c0_i32_1 = arith.constant 0 : i32
    return %c0_i32, %c0_i32_0 : i32, i32
  }
  func.func @transform_4(%arg0: i32) -> (i32, i32) {
    %c0_i32 = arith.constant 0 : i32
    %c0_i32_0 = arith.constant 0 : i32
    %c0_i32_1 = arith.constant 0 : i32
    return %c0_i32, %c0_i32_0 : i32, i32
  }
  func.func @transform_5(%arg0: i32) -> (i32, i32) {
    %c0_i32 = arith.constant 0 : i32
    %c0_i32_0 = arith.constant 0 : i32
    return %arg0, %c0_i32 : i32, i32
  }
}

</mosaic_0001>

<bundles_post_ra>
// kernel: tpu_custom_call.1
= control target key start
LH: loop header
LB: loop body
LE: loop exit
PB: predicated region body
PF: predicated region fallthrough
CT: control target
= control target key end

     0   :  { %10 = vsyncpa [#allocation3], 0  ;;  %s440_s0 = inlined_call_operand.hbm [shape: bf16[2,32], index: 0, kind: input, shape index: {}]   ;;  %s441_s1 = inlined_call_operand.vmem [shape: bf16[2,32], index: 1, kind: input, shape index: {}]   ;;  %s442_s2 = inlined_call_operand.hbm [shape: bf16[32,128], index: 2, kind: input, shape index: {}]   ;;  %s443_s3 = inlined_call_operand.hbm [shape: bf16[32,128], index: 3, kind: input, shape index: {}]   ;;  %s444_s4 = inlined_call_operand.vmem [shape: f32[1,128], index: 4, kind: input, shape index: {}]   ;;  %s445_s5 = inlined_call_operand.hbm [shape: f32[2,128], index: 5, kind: output, shape index: {}]  }
   0x1   :  { %11 = vsyncpa [#allocation6], 0 }
   0x2   :  { %12 = vsyncpa [#allocation4], 0  ;;  %s342_s18 = smov [#allocation5]   ;;  %s248_s22 = scalar_lea.hbm %s442_s2, 256 }
   0x3   :  { %s30_s19 = sshll.u32 %s342_s18, 4  ;;  %p249_p0 = scmp.ne.s32.totalorder %s442_s2, %s248_s22  ;;  %s31_s19 = int_to_ptr.vmem [resolvable:$true] %s30_s19 }
   0x4   :  { %p252_p1 = scmp.lt.u32.totalorder %s248_s22, %s442_s2 }
   0x6   :  { %p254_p2 = pnand %p252_p1, %p249_p0 }
   0x8   :  { %257 = shalt.err (!%p254_p2)
}
   0x9   :  { %s258_s27 = scalar_lea.vmem %s31_s19, 256  ;;  %p263_p4 = scmp.lt.s32.totalorder %s31_s19, %s31_s19 }
   0xa   :  { %p259_p3 = scmp.ne.s32.totalorder %s31_s19, %s258_s27  ;;  %p264_p5 = scmp.lt.s32.totalorder %s258_s27, %s258_s27 }
   0xc   :  { %p265_p6 = por %p264_p5, %p263_p4 }
   0xe   :  { %p266_p7 = pnand %p265_p6, %p259_p3 }
  0x10   :  { %269 = shalt.err (!%p266_p7)
}
  0x11   :  { %s343_s28 = smov 64   ;;  %s344_s29 = smov 4  }
  0x12   :  { %36 = dma.hbm_to_vmem [thread:$0]  %s442_s2, 256, %s31_s19, [#allocation6], %s343_s28, %s343_s28, %s344_s29  }
  0x13   :  { %s345_s7 = smov [#allocation2]   ;;  %s346_s9 = smov [#allocation7]  }
  0x14   :  { %s19_s8 = sshll.u32 %s345_s7, 4  ;;  %s42_s10 = sshll.u32 %s346_s9, 4  ;;  %s20_s8 = int_to_ptr.vmem [resolvable:$true] %s19_s8  ;;  %s43_s10 = int_to_ptr.vmem [resolvable:$true] %s42_s10 }
  0x15   :  { %s270_s13 = scalar_lea.hbm %s440_s0, 16 }
  0x16   :  { %p271_p8 = scmp.ne.s32.totalorder %s440_s0, %s270_s13  ;;  %p274_p9 = scmp.lt.u32.totalorder %s270_s13, %s440_s0 }
  0x18   :  { %p276_p10 = pnand %p274_p9, %p271_p8 }
  0x1a   :  { %279 = shalt.err (!%p276_p10)
}
  0x1b   :  { %s280_s2 = scalar_lea.vmem %s20_s8, 16  ;;  %s284_s18 = scalar_lea.vmem %s20_s8, 32 }
  0x1c   :  { %p281_p11 = scmp.ne.s32.totalorder %s20_s8, %s280_s2  ;;  %p285_p12 = scmp.lt.s32.totalorder %s20_s8, %s20_s8 }
  0x1d   :  { %p286_p13 = scmp.lt.s32.totalorder %s284_s18, %s280_s2 }
  0x1f   :  { %p287_p0 = por %p286_p13, %p285_p12 }
  0x21   :  { %p288_p1 = pnand %p287_p0, %p281_p11 }
  0x23   :  { %291 = shalt.err (!%p288_p1)
}
  0x24   :  { %22 = dma.hbm_to_vmem [thread:$0]  %s440_s0, 16, %s20_s8, [#allocation3]  }
  0x25   :  { %s292_s23 = scalar_lea.hbm %s443_s3, 256 }
  0x26   :  { %p293_p2 = scmp.ne.s32.totalorder %s443_s3, %s292_s23  ;;  %p296_p3 = scmp.lt.u32.totalorder %s292_s23, %s443_s3 }
  0x28   :  { %p298_p4 = pnand %p296_p3, %p293_p2 }
  0x2a   :  { %301 = shalt.err (!%p298_p4)
}
  0x2b   :  { %s302_s30 = scalar_lea.vmem %s43_s10, 256  ;;  %p307_p6 = scmp.lt.s32.totalorder %s43_s10, %s43_s10 }
  0x2c   :  { %p303_p5 = scmp.ne.s32.totalorder %s43_s10, %s302_s30  ;;  %p308_p7 = scmp.lt.s32.totalorder %s302_s30, %s302_s30 }
  0x2e   :  { %p309_p8 = por %p308_p7, %p307_p6 }
  0x30   :  { %p310_p9 = pnand %p309_p8, %p303_p5 }
  0x32   :  { %313 = shalt.err (!%p310_p9)
}
  0x33   :  { %48 = dma.hbm_to_vmem [thread:$0]  %s443_s3, 256, %s43_s10, [#allocation6], %s343_s28, %s343_s28, %s344_s29  }
  0x34   :  { %336 = dma.done.wait [#allocation3], 16  }
  0x35   :  { %337 = vsyncadd [#allocation3], 4294967280 }
  0x36   :  { %338 = dma.done.wait [#allocation6], 512  }
  0x37   :  { %339 = vsyncadd [#allocation6], 4294966784  ;;  %v347_v0 = vmov 0.0   ;;  %vm348_vm0 = vmmov 0   ;;  %v244_v1 = vld [vmem:[#allocation7] sm:$0xff]   ;;  %v245_v2 = vld [vmem:[#allocation5] sm:$0xff]  }
  0x38   :  { %220 = vmatprep.subr.bf16.mxu0 %v347_v0  ;;  %228 = vmatprep.subr.bf16.mxu1 %v347_v0  ;;  %v246_v3 = vld [vmem:[#allocation7 + $0x8] sm:$0xff]   ;;  %v247_v4 = vld [vmem:[#allocation5 + $0x8] sm:$0xff]   ;;  %vm83_vm1 = vcmask 261120   ;;  %s349_s8 = smov [#allocation8]  }
  0x39   :  { %224 = vmatprep.mubr.msk.bf16.mxu0 %vm348_vm0, %v347_v0  ;;  %232 = vmatprep.mubr.msk.bf16.mxu1 %vm348_vm0, %v347_v0  ;;  %v66_v5 = vld [vmem:[%s441_s1] sm:$0x1]  ;;  %s197_s9 = sshll.u32 %s349_s8, 4  ;;  %s198_s9 = int_to_ptr.vmem [resolvable:$true] %s197_s9 }
  0x3a   :  { %221 = vmatpush3.bf16.msra.mxu0 %v244_v1  ;;  %229 = vmatpush3.bf16.msra.mxu1 %v245_v2  ;;  %v61_v6 = vld [vmem:[#allocation2] sm:$0x1]  ;;  %s314_s1 = scalar_lea.vmem %s198_s9, 32  ;;  %p319_p11 = scmp.lt.s32.totalorder %s198_s9, %s198_s9 }
  0x3b   :  { %222 = vmatprep.subr.bf16.mxu0 %v347_v0  ;;  %230 = vmatprep.subr.bf16.mxu1 %v347_v0  ;;  %v213_v9 = vld [vmem:[%s444_s4] ss:$0 sm:$0xff]  ;;  %p315_p10 = scmp.ne.s32.totalorder %s198_s9, %s314_s1  ;;  %p320_p12 = scmp.lt.s32.totalorder %s314_s1, %s314_s1 }
  0x3d   :  { %p321_p13 = por %p320_p12, %p319_p11 }
  0x3e   :  { %223 = vmatpush3.bf16.msra.mxu0 %v246_v3  ;;  %231 = vmatpush3.bf16.msra.mxu1 %v247_v4 }
  0x3f   :  { %p322_p0 = pnand %p321_p13, %p315_p10 }
  0x41   :  { %225 = vmatmul.mubr.msk.bf16.vlgmr.msra.gmra.mrb[0].mxu0 %vm83_vm1, %v66_v5  ;;  %233 = vmatmul.mubr.msk.bf16.vlgmr.msra.gmra.mrb[0].mxu1 %vm83_vm1, %v61_v6 }
 0x114   :  { %v121_v7 = vpop.f32.mrb[0].mxu0  ;;  %v176_v8 = vpop.f32.mrb[0].mxu1 }
 0x115   :  { %v226_v10 = vpop.f32.mrb[1].mxu0  ;;  %v177_v11 = vadd.f32 %v176_v8, %v121_v7  ;;  %v234_v12 = vpop.f32.mrb[1].mxu1 }
 0x116   :  { %v124_v13 = vpop.f32.mrb[2].mxu0  ;;  %v179_v14 = vpop.f32.mrb[2].mxu1 }
 0x117   :  { %v227_v15 = vpop.f32.mrb[3].mxu0  ;;  %v189_v16 = vadd.f32 %v213_v9, %v177_v11  ;;  %v235_v17 = vpop.f32.mrb[3].mxu1 }
 0x119   :  { %190 = vst [vmem:[#allocation8] sm:$0x3] %v189_v16 }
 0x11a   :  { %325 = shalt.err (!%p322_p0)
}
 0x11b   :  { %s326_s11 = scalar_lea.hbm %s445_s5, 32 }
 0x11c   :  { %p327_p1 = scmp.ne.s32.totalorder %s445_s5, %s326_s11  ;;  %p330_p2 = scmp.lt.u32.totalorder %s326_s11, %s445_s5 }
 0x11e   :  { %p332_p3 = pnand %p330_p2, %p327_p1 }
 0x120   :  { %335 = shalt.err (!%p332_p3)
}
 0x121   :  { %200 = dma.vmem_to_hbm [thread:$0]  %s198_s9, 32, %s445_s5, [#allocation4]  }
 0x122   :  { %340 = dma.done.wait [#allocation4], 32  }
 0x123   :  { %341 = vsyncadd [#allocation4], 4294967264 }
 0x124   :  { %204 = vsyncpa [#allocation3], 1 }
 0x125   :  { %205 = vsyncpa [#allocation6], 1 }
 0x126   :  { %206 = vsyncpa [#allocation4], 1 }

</bundles_post_ra>
